<compile_context>
chip_gen: v5e
topology: v5e:2x2
jax: 0.10.0
libtpu: 0.0.40
codegen_flags: <defaults>
</compile_context>

<pallas_src>
import jax
import jax.numpy as jnp
import numpy as np
from jax.experimental import pallas as pl
from jax.experimental.pallas import tpu as pltpu

EPS = 1e-5
_VMEM_LIMIT_BYTES = 48 * 1024 * 1024  # stay under v7x's 64 MiB physical VMEM


# ----------------------------- kernels ------------------------------------


def _matmul_stats_kernel(p_ref, w_ref, y_ref, st_ref):
    """conv-as-matmul on one M tile + per-tile partial BN statistics."""
    y = jnp.dot(p_ref[...], w_ref[...], preferred_element_type=jnp.float32)
    y_ref[...] = y.astype(y_ref.dtype)
    s = jnp.sum(y, axis=0, keepdims=True)        # (1, Cp) partial sum
    ss = jnp.sum(y * y, axis=0, keepdims=True)   # (1, Cp) partial sum of squares
    st_ref[0] = jnp.concatenate([s, ss], axis=0)  # (2, Cp)


def _bn_act_kernel(y_ref, aff_ref, o_ref):
    """folded BN (scale/shift) + ReLU on one M tile."""
    y = y_ref[...].astype(jnp.float32)
    o_ref[...] = jnp.maximum(
        y * aff_ref[0:1, :] + aff_ref[1:2, :], 0.0).astype(o_ref.dtype)


def _bn_add_act_kernel(y_ref, aff_ref, id_ref, o_ref):
    """folded BN (scale/shift) + residual add + ReLU on one M tile."""
    y = y_ref[...].astype(jnp.float32)
    res = id_ref[...].astype(jnp.float32)
    o_ref[...] = jnp.maximum(
        y * aff_ref[0:1, :] + aff_ref[1:2, :] + res, 0.0).astype(o_ref.dtype)


# ----------------------------- helpers ------------------------------------


def _round_up(x, m):
    return ((x + m - 1) // m) * m


def _pad2d(a, rows, cols):
    return jnp.pad(a, ((0, rows - a.shape[0]), (0, cols - a.shape[1])))


def _pad1d(v, cols):
    return jnp.pad(v.astype(jnp.float32), (0, cols - v.shape[0]))


def _choose_tile_m(m, kp, cp):
    """Pick an M tile: big for pipelining, but bounded by a VMEM budget."""
    if m >= 8192:
        tile = 2048
    elif m >= 2048:
        tile = 1024
    elif m >= 512:
        tile = 256
    else:
        tile = _round_up(m, 8)
    # double-buffered bf16 patches + bf16 y (in/out) + f32 identity + f32 out
    per_row = 2 * (2 * kp) + 2 * (2 * cp) + 2 * (2 * cp) + 2 * (4 * cp) + 2 * (4 * cp)
    budget = 36 * 1024 * 1024
    while tile > 8 and tile * per_row > budget:
        tile //= 2
    return max(8, (tile // 8) * 8)


def _im2col_3x3(x_nhwc, stride=1):
    """x: (N, H, W, C) -> (N*Ho*Wo, 9*C), pad=1, 3x3 kernel, (kh, kw, cin) cols."""
    n, h, w, c = x_nhwc.shape
    xp = jnp.pad(x_nhwc, ((0, 0), (1, 1), (1, 1), (0, 0)))
    ho = (h + 2 - 3) // stride + 1
    wo = (w + 2 - 3) // stride + 1
    cols = []
    for kh in range(3):
        for kw in range(3):
            cols.append(
                xp[:, kh:kh + ho * stride:stride, kw:kw + wo * stride:stride, :])
    patches = jnp.concatenate(cols, axis=-1)     # (N, Ho, Wo, 9*C)
    return patches.reshape(n * ho * wo, 9 * c)


# ------------------------- pallas_call wrappers ----------------------------


def _conv_stats(patches, wmat, tile_m, m_valid, y_dtype=jnp.bfloat16):
    """Pass 1: tiled matmul + partial stats; wrapper-side global mean/var."""
    mp, kp = patches.shape
    cp = wmat.shape[1]
    n_tiles = mp // tile_m

    flops = 2 * mp * kp * cp
    bytes_acc = (patches.size * patches.dtype.itemsize
                 + wmat.size * wmat.dtype.itemsize
                 + mp * cp * jnp.dtype(y_dtype).itemsize
                 + n_tiles * 2 * cp * 4)

    y, stats = pl.pallas_call(
        _matmul_stats_kernel,
        out_shape=(jax.ShapeDtypeStruct((mp, cp), y_dtype),
                   jax.ShapeDtypeStruct((n_tiles, 2, cp), jnp.float32)),
        grid_spec=pltpu.PrefetchScalarGridSpec(
            num_scalar_prefetch=0,
            grid=(n_tiles,),
            in_specs=[pl.BlockSpec((tile_m, kp), lambda i: (i, 0)),
                      pl.BlockSpec((kp, cp), lambda i: (0, 0))],
            out_specs=[pl.BlockSpec((tile_m, cp), lambda i: (i, 0)),
                       pl.BlockSpec((1, 2, cp), lambda i: (i, 0, 0))]),
        compiler_params=pltpu.CompilerParams(
            dimension_semantics=("parallel",),
            vmem_limit_bytes=_VMEM_LIMIT_BYTES),
        cost_estimate=pl.CostEstimate(flops=int(flops), transcendentals=0,
                                      bytes_accessed=int(bytes_acc)),
    )(patches, wmat)

    ch_sum = jnp.sum(stats[:, 0, :], axis=0)     # (Cp,)
    ch_ssq = jnp.sum(stats[:, 1, :], axis=0)     # (Cp,)
    # global (training-mode) batch statistics; padded rows contribute exact 0.
    mean = ch_sum / m_valid
    var = jnp.maximum(ch_ssq / m_valid - mean * mean, 0.0)
    return y, mean, var


def _bn_act(y, mean, var, gamma, beta, tile_m, identity=None,
            out_dtype=jnp.float32):
    """Pass 2: folded-BN normalize (+ residual) + ReLU, tiled over M."""
    mp, cp = y.shape
    n_tiles = mp // tile_m

    scale = gamma * jax.lax.rsqrt(var + EPS)
    shift = beta - mean * scale
    affine = jnp.stack([scale, shift]).astype(jnp.float32)   # (2, Cp)

    tile_spec = pl.BlockSpec((tile_m, cp), lambda i: (i, 0))
    aff_spec = pl.BlockSpec((2, cp), lambda i: (0, 0))
    out_elt = jnp.dtype(out_dtype).itemsize
    y_bytes = y.size * y.dtype.itemsize

    if identity is None:
        kern = _bn_act_kernel
        ins = (y, affine)
        in_specs = [tile_spec, aff_spec]
        id_bytes = 0
    else:
        kern = _bn_add_act_kernel
        ins = (y, affine, identity)
        in_specs = [tile_spec, aff_spec, tile_spec]
        id_bytes = identity.size * identity.dtype.itemsize

    flops = (4 if identity is not None else 3) * mp * cp
    bytes_acc = y_bytes + 2 * cp * 4 + mp * cp * out_elt + id_bytes

    return pl.pallas_call(
        kern,
        out_shape=jax.ShapeDtypeStruct((mp, cp), out_dtype),
        grid_spec=pltpu.PrefetchScalarGridSpec(
            num_scalar_prefetch=0,
            grid=(n_tiles,),
            in_specs=in_specs,
            out_specs=tile_spec),
        compiler_params=pltpu.CompilerParams(
            dimension_semantics=("parallel",),
            vmem_limit_bytes=_VMEM_LIMIT_BYTES),
        cost_estimate=pl.CostEstimate(flops=int(flops), transcendentals=0,
                                      bytes_accessed=int(bytes_acc)),
    )(*ins)


# ------------------------------ forward ------------------------------------


def resnet_block_forward(x_nchw, w1, g1, b1, w2, g2, b2):
    """stride=1, downsample=None path of ResNetBlock (PyTorch training-mode BN)."""
    n, c, h, w = x_nchw.shape
    planes = w1.shape[0]

    x_nhwc = jnp.transpose(x_nchw, (0, 2, 3, 1)).astype(jnp.float32)  # NHWC
    m = n * h * w

    cp = _round_up(planes, 128)                 # lane-dense output channels
    kp1 = _round_up(9 * c, 128)                 # lane-dense K for conv1
    kp2 = _round_up(9 * planes, 128)            # lane-dense K for conv2
    tile_m = _choose_tile_m(m, max(kp1, kp2), cp)
    mp = _round_up(m, tile_m)

    # --- conv1 + bn1 + relu ---
    p1 = _pad2d(_im2col_3x3(x_nhwc.astype(jnp.bfloat16)), mp, kp1)
    wm1 = jnp.transpose(w1, (2, 3, 1, 0)).reshape(9 * c, planes)
    wm1 = _pad2d(wm1.astype(jnp.bfloat16), kp1, cp)
    y1, mean1, var1 = _conv_stats(p1, wm1, tile_m, m)
    out1 = _bn_act(y1, mean1, var1, _pad1d(g1, cp), _pad1d(b1, cp), tile_m,
                   identity=None, out_dtype=jnp.bfloat16)          # (mp, cp)

    # --- conv2 + bn2 + residual add + relu ---
    out1_nhwc = out1[:m, :planes].reshape(n, h, w, planes)
    p2 = _pad2d(_im2col_3x3(out1_nhwc), mp, kp2)
    wm2 = jnp.transpose(w2, (2, 3, 1, 0)).reshape(9 * planes, planes)
    wm2 = _pad2d(wm2.astype(jnp.bfloat16), kp2, cp)
    identity = _pad2d(x_nhwc.reshape(m, c), mp, cp)                 # f32 residual
    y2, mean2, var2 = _conv_stats(p2, wm2, tile_m, m)
    out2 = _bn_act(y2, mean2, var2, _pad1d(g2, cp), _pad1d(b2, cp), tile_m,
                   identity=identity, out_dtype=jnp.float32)        # (mp, cp)

    out = out2[:m, :planes].reshape(n, h, w, planes)
    return jnp.transpose(out, (0, 3, 1, 2))                         # NCHW


# ------------------------------ reference ----------------------------------


def _ref_forward(x, w1, g1, b1, w2, g2, b2):
    """Pure-JAX f32 reference matching PyTorch semantics (training-mode BN)."""
    def conv(y, wgt):
        return jax.lax.conv_general_dilated(
            y, wgt, (1, 1), ((1, 1), (1, 1)),
            dimension_numbers=("NCHW", "OIHW", "NCHW"))

    def bn(y, g, b):
        mean = jnp.mean(y, axis=(0, 2, 3), keepdims=True)
        var = jnp.mean((y - mean) ** 2, axis=(0, 2, 3), keepdims=True)
        return ((y - mean) * jax.lax.rsqrt(var + EPS)
                * g.reshape(1, -1, 1, 1) + b.reshape(1, -1, 1, 1))

    out = jax.nn.relu(bn(conv(x, w1), g1, b1))
    out = bn(conv(out, w2), g2, b2) + x
    return jax.nn.relu(out)


if __name__ == "__main__":
    key = jax.random.PRNGKey(0)
    k = jax.random.split(key, 8)

    N, C, H, W = 2, 4, 16, 16      # inplanes = planes = 4, stride = 1
    planes = C

    x = jax.random.normal(k[0], (N, C, H, W), dtype=jnp.float32)
    w1 = 0.1 * jax.random.normal(k[1], (planes, C, 3, 3), dtype=jnp.float32)
    w2 = 0.1 * jax.random.normal(k[2], (planes, planes, 3, 3), dtype=jnp.float32)
    g1 = 1.0 + 0.1 * jax.random.normal(k[3], (planes,), dtype=jnp.float32)
    b1 = 0.1 * jax.random.normal(k[4], (planes,), dtype=jnp.float32)
    g2 = 1.0 + 0.1 * jax.random.normal(k[5], (planes,), dtype=jnp.float32)
    b2 = 0.1 * jax.random.normal(k[6], (planes,), dtype=jnp.float32)

    out = jax.block_until_ready(resnet_block_forward(x, w1, g1, b1, w2, g2, b2))
    ref = jax.block_until_ready(_ref_forward(x, w1, g1, b1, w2, g2, b2))

    # bf16 matmul inputs / bf16 intermediate conv outputs and activation
    # (f32 accumulation, f32 BN stats, f32 residual) vs. the pure-f32
    # reference -> loosen tolerance accordingly.
    np.testing.assert_allclose(np.asarray(out), np.asarray(ref),
                               rtol=5e-2, atol=5e-2)
    print("KERNEL_OK")
</pallas_src>

<mosaic_0001>
module attributes {stable_mosaic.version = 11 : i64} {
  func.func @_matmul_stats_kernel(%arg0: i32, %arg1: memref<256x128xbf16, #tpu.memory_space<vmem>>, %arg2: memref<128x128xbf16, #tpu.memory_space<vmem>>, %arg3: memref<256x128xbf16, #tpu.memory_space<vmem>>, %arg4: memref<1x2x128xf32, #tpu.memory_space<vmem>>) attributes {dimension_semantics = [#tpu.dimension_semantics<parallel>], iteration_bounds = array<i64: 2>, scalar_prefetch = 0 : i64, scratch_operands = 0 : i64, tpu.core_type = #tpu.core_type<tc>, window_params = [{transform_indices = @transform_0, window_bounds = array<i64: 256, 128>}, {pipeline_mode = #tpu.pipeline_mode<synchronous>, transform_indices = @transform_1, window_bounds = array<i64: 128, 128>}, {transform_indices = @transform_2, window_bounds = array<i64: 256, 128>}, {transform_indices = @transform_3, window_bounds = array<i64: 1, 2, 128>}]} {
    %c0 = arith.constant 0 : index
    %c0_0 = arith.constant 0 : index
    %0 = vector.load %arg1[%c0, %c0_0] : memref<256x128xbf16, #tpu.memory_space<vmem>>, vector<256x128xbf16>
    %c0_1 = arith.constant 0 : index
    %c0_2 = arith.constant 0 : index
    %1 = vector.load %arg2[%c0_1, %c0_2] : memref<128x128xbf16, #tpu.memory_space<vmem>>, vector<128x128xbf16>
    %cst = arith.constant dense<0.000000e+00> : vector<256x128xf32>
    %2 = tpu.matmul %0, %1, %cst {dimension_numbers = #tpu.dot_dimension_numbers<[1], [0], [0], [1], [0, 0, 1, 1], [], []>} : vector<256x128xbf16>, vector<128x128xbf16>, vector<256x128xf32> -> vector<256x128xf32>
    %3 = arith.truncf %2 : vector<256x128xf32> to vector<256x128xbf16>
    %c0_3 = arith.constant 0 : index
    %c0_4 = arith.constant 0 : index
    %4 = vector.load %arg3[%c0_3, %c0_4] : memref<256x128xbf16, #tpu.memory_space<vmem>>, vector<256x128xbf16>
    tpu.vector_store %arg3[%c0_3, %c0_4], %3 {strides = array<i32>} : memref<256x128xbf16, #tpu.memory_space<vmem>>, vector<256x128xbf16>,
    %cst_5 = arith.constant dense<0.000000e+00> : vector<128xf32>
    %5 = vector.multi_reduction <add>, %2, %cst_5 [0] : vector<256x128xf32> to vector<128xf32>
    %6 = vector.shape_cast %5 : vector<128xf32> to vector<1x128xf32>
    %7 = arith.mulf %2, %2 : vector<256x128xf32>
    %cst_6 = arith.constant dense<0.000000e+00> : vector<128xf32>
    %8 = vector.multi_reduction <add>, %7, %cst_6 [0] : vector<256x128xf32> to vector<128xf32>
    %9 = vector.shape_cast %8 : vector<128xf32> to vector<1x128xf32>
    %10 = tpu.concatenate %6, %9 in 0 : vector<1x128xf32>, vector<1x128xf32> -> vector<2x128xf32>
    %c0_7 = arith.constant 0 : index
    %c0_8 = arith.constant 0 : index
    %c0_9 = arith.constant 0 : index
    %11 = vector.load %arg4[%c0_7, %c0_8, %c0_9] : memref<1x2x128xf32, #tpu.memory_space<vmem>>, vector<1x2x128xf32>
    %12 = vector.shape_cast %11 : vector<1x2x128xf32> to vector<2x128xf32>
    %13 = vector.shape_cast %10 : vector<2x128xf32> to vector<1x2x128xf32>
    tpu.vector_store %arg4[%c0_7, %c0_8, %c0_9], %13 {strides = array<i32>} : memref<1x2x128xf32, #tpu.memory_space<vmem>>, vector<1x2x128xf32>,
    return
  }
  func.func @transform_0(%arg0: i32) -> (i32, i32) {
    %c0_i32 = arith.constant 0 : i32
    %c0_i32_0 = arith.constant 0 : i32
    return %arg0, %c0_i32 : i32, i32
  }
  func.func @transform_1(%arg0: i32) -> (i32, i32) {
    %c0_i32 = arith.constant 0 : i32
    %c0_i32_0 = arith.constant 0 : i32
    %c0_i32_1 = arith.constant 0 : i32
    return %c0_i32, %c0_i32_0 : i32, i32
  }
  func.func @transform_2(%arg0: i32) -> (i32, i32) {
    %c0_i32 = arith.constant 0 : i32
    %c0_i32_0 = arith.constant 0 : i32
    return %arg0, %c0_i32 : i32, i32
  }
  func.func @transform_3(%arg0: i32) -> (i32, i32, i32) {
    %c0_i32 = arith.constant 0 : i32
    %c0_i32_0 = arith.constant 0 : i32
    %c0_i32_1 = arith.constant 0 : i32
    return %arg0, %c0_i32, %c0_i32_0 : i32, i32, i32
  }
}

</mosaic_0001>

<bundles_post_ra>
// kernel: tpu_custom_call.1
= control target key start
LH: loop header
LB: loop body
LE: loop exit
PB: predicated region body
PF: predicated region fallthrough
CT: control target
= control target key end

     0   :  { %9 = vsyncpa [#allocation3], 0  ;;  %s1681_s0 = inlined_call_operand.hbm [shape: bf16[512,128], index: 0, kind: input, shape index: {}]   ;;  %s1682_s1 = inlined_call_operand.hbm [shape: bf16[128,128], index: 1, kind: input, shape index: {}]   ;;  %s1683_s2 = inlined_call_operand.hbm [shape: bf16[512,128], index: 2, kind: output, shape index: {0}]   ;;  %s1684_s3 = inlined_call_operand.hbm [shape: f32[2,2,128], index: 3, kind: output, shape index: {1}]  }
   0x1   :  { %11 = vsyncpa [#allocation3 + $0x1], 0 }
   0x2   :  { %12 = vsyncpa [#allocation6], 0 }
   0x3   :  { %13 = vsyncpa [#allocation4], 0 }
   0x4   :  { %15 = vsyncpa [#allocation4 + $0x1], 0 }
   0x5   :  { %16 = vsyncpa [#allocation9], 0 }
   0x6   :  { %18 = vsyncpa [#allocation9 + $0x1], 0  ;;  %s1341_s12 = smov 0   ;;  %s1343_s13 = smov 0  }
   0x7   :  { %s1345_s14 = smov 0   ;;  %s1347_s15 = smov 0  }
   0x8 LB: > { %s1362_s16 = sadd.s32 4294967295, %s1314_s15   ;;  %s826_s17 = sadd.s32 4294967294, %s1314_s15   ;;  %s1314_s15 = sphi %s1347_s15, %s1694_s15   ;;  %s1310_s14 = sphi %s1345_s14, %s1693_s14   ;;  %s1306_s13 = sphi %s1343_s13, %s1692_s13   ;;  %s1302_s12 = sphi %s1341_s12, %s1691_s12  }
   0x9   : > { %p44_p0 = scmp.ne.s32.totalorder %s1306_s13, %s1302_s12  ;;  %p45_p1 = scmp.eq.s32.totalorder %s1362_s16, 0 }
   0xa   : > { %p89_p2 = scmp.eq.s32.totalorder %s1362_s16, 1  ;;  %p95_p3 = scmp.eq.s32.totalorder %s826_s17, 1 }
   0xb   : > { %p1371_p4 = por %p45_p1, %p44_p0  ;;  %p827_p5 = scmp.ge.s32.totalorder %s1314_s15, 1 }
   0xc   : > { %p1376_p6 = por %p95_p3, %p44_p0  ;;  %p128_p7 = scmp.lt.s32.totalorder %s1314_s15, 3 }
   0xd   : > { %s139_s22 = sshll.u32 %s1682_s1, 4  ;;  %s1316_s24 = smov [#allocation5]   ;;  %s140_s22 = int_to_ptr.hbm [resolvable:$true] %s139_s22 }
   0xe   : > { %p1384_p8 = pnand %p827_p5, %p128_p7  ;;  %s141_s25 = sshll.u32 %s1316_s24, 4  ;;  %s142_s25 = int_to_ptr.vmem [resolvable:$true] %s141_s25 }
   0xf   : > { %s1394_s26 = sadd.s32 1, %s1314_s15   ;;  %s1317_s27 = smov 64  }
  0x10   : > { %p1096_p9 = pneg %p1384_p8  ;;  %s1318_s28 = smov 4  }
  0x11   : > { %s28_s29 = ssub.s32 %s1314_s15, %s1394_s26  ;;  %s31_s30 = sadd.s32 1, %s1310_s14 }
  0x12   : > { %p1097_p10 = pnand %p1096_p9, %p45_p1  ;;  %p29_p12 = scmp.eq.s32.totalorder %s28_s29, 0 }
  0x13   : > { %p38_p13 = scmp.ne.s32.totalorder %s1310_s14, %s1306_s13  ;;  %p39_p0 = scmp.eq.s32.totalorder %s1314_s15, 0 }
  0x14   : > { %1099 = dma.hbm_to_vmem [thread:$0]  (!%p1097_p10), %s140_s22, 1024, %s142_s25, [#allocation6], %s1317_s27, %s1317_s27, %s1318_s28  }
  0x15   : > { %s1406_s4 = scalar_select %p29_p12, %s1310_s14, %s31_s30  }
  0x16   : > { %p1410_p3 = por %p89_p2, %p38_p13  ;;  %p1112_p5 = scmp.lt.s32.totalorder %s1314_s15, 2 }
  0x17   : > { %s155_s6 = sand.u32 1, %s1310_s14   ;;  %s941_s7 = sshll.u32 %s1314_s15, 7 }
  0x18   : > { %p40_p7 = por %p39_p0, %p38_p13  ;;  %s830_s8 = sshll.u32 %s155_s6, 7 }
  0x19   : > { %s164_s11 = scalar_lea.hbm %s1681_s0, %s941_s7  ;;  %s159_s20 = scalar_lea.vmem [#allocation2], %s830_s8 }
  0x1a   : > { %s165_s17 = sshll.u32 %s164_s11, 4  ;;  %s167_s21 = sshll.u32 %s159_s20, 4  ;;  %s166_s17 = int_to_ptr.hbm [resolvable:$true] %s165_s17  ;;  %s168_s21 = int_to_ptr.vmem [resolvable:$true] %s167_s21 }
  0x1b   : > { %p1420_p9 = pnand %p1112_p5, %p40_p7  ;;  %s156_s24 = scalar_lea.sflag [#allocation3], %s155_s6 }
  0x1c   : > { %s1182_s25 = sshra.s32 %s166_s17, 4  ;;  %s1189_s8 = scalar_lea.hbm %s1681_s0, 256  ;;  %s1183_s25 = int_to_ptr.hbm [resolvable:$true] %s1182_s25 }
  0x1d   : > { %s1184_s29 = scalar_lea.hbm %s1183_s25, 128  ;;  %p1186_p10 = pneg %p1420_p9 }
  0x1e   : > { %p1185_p2 = scmp.ne.s32.totalorder %s1183_s25, %s1184_s29  ;;  %p1190_p0 = scmp.lt.s32.totalorder %s1183_s25, %s1681_s0 }
  0x1f   : > { %p1191_p5 = scmp.lt.s32.totalorder %s1189_s8, %s1184_s29 }
  0x20   : > { %p1187_p12 = pnand %p1186_p10, %p1185_p2 }
  0x21   : > { %p1192_p7 = por %p1191_p5, %p1190_p0 }
  0x22   : > { %p1188_p13 = pneg %p1187_p12 }
  0x24   : > { %p1193_p11 = pnand %p1192_p7, %p1188_p13 }
  0x26   : > { %1196 = shalt.err (!%p1193_p11)
}
  0x27   : > { %1103 = dma.hbm_to_vmem [thread:$0]  (!%p1420_p9), %s166_s17, 2048, %s168_s21, %s156_s24, %s1317_s27, %s1317_s27, %s1318_s28  }
  0x28   : > { %179 = sbr.rel (%p1384_p8) target bundleno = 330 (0x14a), region = 28  ;;  %s1440_s6 = sand.u32 (!%p1384_p8), 1, %s1306_s13  }
  0x29   : > { %s834_s11 = sshll.u32 (!%p1384_p8), %s1440_s6, 7  ;;  %s182_s20 = scalar_lea.sflag (!%p1384_p8), [#allocation3], %s1440_s6 }
  0x2a   : > { %s1446_s25 = scalar_lea.vmem (!%p1384_p8), [#allocation2], %s834_s11 }
  0x2d   : > { %1285 = dma.done.wait (%p1371_p4), %s182_s20, 2048  }
  0x2e   : > { %1287 = vsyncadd (%p1371_p4), %s182_s20, 4294965248 }
  0x2f   : > { %1289 = dma.done.wait (%p45_p1), [#allocation6], 1024  }
  0x30   : > { %1291 = vsyncadd (%p45_p1), [#allocation6], 4294966272  ;;  %v965_v0 = vld [vmem:[#allocation5 + $0x38] sm:$0xff]  ;;  %v964_v1 = vld [vmem:[#allocation5 + $0x30] sm:$0xff]  ;;  %s1484_s18 = scalar_lea.vmem [#allocation7], %s834_s11  ;;  %s966_s23 = sshll.u32 %s1362_s16, 7 }
  0x31   : > { %413 = vmatpush.bf16.msra.mxu0 %v965_v0  ;;  %1062 = vmatpush.bf16.msra.mxu1 %v965_v0  ;;  %v963_v2 = vld [vmem:[#allocation5 + $0x28] sm:$0xff]  ;;  %v962_v3 = vld [vmem:[#allocation5 + $0x20] sm:$0xff]  ;;  %v961_v4 = vld [vmem:[#allocation5 + $0x18] sm:$0xff]  ;;  %s692_s17 = scalar_lea.hbm %s1683_s2, %s966_s23  ;;  %s693_s21 = sshll.u32 %s1484_s18, 4  ;;  %s1571_s21 = int_to_ptr.vmem [resolvable:$true] %s693_s21 }
  0x32   : > { %1063 = vmatpush.bf16.msra.mxu2 %v965_v0  ;;  %1064 = vmatpush.bf16.msra.mxu3 %v965_v0  ;;  %v960_v5 = vld [vmem:[#allocation5 + $0x10] sm:$0xff]  ;;  %v959_v6 = vld [vmem:[#allocation5 + $0x8] sm:$0xff]  ;;  %v958_v7 = vld [vmem:[#allocation5] sm:$0xff]  ;;  %s695_s22 = sshll.u32 %s692_s17, 4  ;;  %s676_s24 = scalar_lea.sflag [#allocation4], %s1440_s6  ;;  %s1573_s22 = int_to_ptr.hbm [resolvable:$true] %s695_s22 }
  0x33   : > { %v942_v8 = vld [vmem:[%s1446_s25] sm:$0xff]  ;;  %v943_v12 = vld [vmem:[%s1446_s25 + $0x8] sm:$0xff]  ;;  %v944_v16 = vld [vmem:[%s1446_s25 + $0x10] sm:$0xff]  ;;  %s1226_s29 = sshra.s32 %s1573_s22, 4  ;;  %s1232_s9 = scalar_lea.hbm %s1683_s2, 256  ;;  %s1227_s29 = int_to_ptr.hbm [resolvable:$true] %s1226_s29 }
  0x34   : > { %v946_v9 = vld [vmem:[%s1446_s25 + $0x20] sm:$0xff]  ;;  %v947_v13 = vld [vmem:[%s1446_s25 + $0x28] sm:$0xff]  ;;  %v948_v17 = vld [vmem:[%s1446_s25 + $0x30] sm:$0xff]  ;;  %s1228_s30 = scalar_lea.hbm %s1227_s29, 128  ;;  %p1233_p11 = scmp.lt.s32.totalorder %s1227_s29, %s1683_s2 }
  0x35   : > { %414 = vmatpush.bf16.msra.mxu0 %v964_v1  ;;  %1065 = vmatpush.bf16.msra.mxu1 %v964_v1  ;;  %v950_v10 = vld [vmem:[%s1446_s25 + $0x40] sm:$0xff]  ;;  %v951_v14 = vld [vmem:[%s1446_s25 + $0x48] sm:$0xff]  ;;  %v952_v18 = vld [vmem:[%s1446_s25 + $0x50] sm:$0xff]  ;;  %p1229_p1 = scmp.ne.s32.totalorder %s1227_s29, %s1228_s30  ;;  %p1234_p9 = scmp.lt.s32.totalorder %s1232_s9, %s1228_s30 }
  0x36   : > { %1066 = vmatpush.bf16.msra.mxu2 %v964_v1  ;;  %1067 = vmatpush.bf16.msra.mxu3 %v964_v1  ;;  %v954_v11 = vld [vmem:[%s1446_s25 + $0x60] sm:$0xff]  ;;  %v955_v15 = vld [vmem:[%s1446_s25 + $0x68] sm:$0xff]  ;;  %v956_v19 = vld [vmem:[%s1446_s25 + $0x70] sm:$0xff] }
  0x37   : > { %v945_v20 = vld [vmem:[%s1446_s25 + $0x18] sm:$0xff]  ;;  %p1230_p4 = pnand %p1229_p1, %p1410_p3  ;;  %p1235_p2 = por %p1234_p9, %p1233_p11 }
  0x38   : > { %v949_v21 = vld [vmem:[%s1446_s25 + $0x38] sm:$0xff] }
  0x39   : > { %415 = vmatpush.bf16.msra.mxu0 %v963_v2  ;;  %1068 = vmatpush.bf16.msra.mxu1 %v963_v2  ;;  %v953_v22 = vld [vmem:[%s1446_s25 + $0x58] sm:$0xff]  ;;  %p1231_p8 = pneg %p1230_p4 }
  0x3a   : > { %1069 = vmatpush.bf16.msra.mxu2 %v963_v2  ;;  %1070 = vmatpush.bf16.msra.mxu3 %v963_v2  ;;  %v957_v23 = vld [vmem:[%s1446_s25 + $0x78] sm:$0xff] }
  0x3b   : > { %p1236_p10 = pnand %p1235_p2, %p1231_p8 }
  0x3d   : > { %416 = vmatpush.bf16.msra.mxu0 %v962_v3  ;;  %1071 = vmatpush.bf16.msra.mxu1 %v962_v3 }
  0x3e   : > { %1072 = vmatpush.bf16.msra.mxu2 %v962_v3  ;;  %1073 = vmatpush.bf16.msra.mxu3 %v962_v3 }
  0x41   : > { %417 = vmatpush.bf16.msra.mxu0 %v961_v4  ;;  %1074 = vmatpush.bf16.msra.mxu1 %v961_v4 }
  0x42   : > { %1075 = vmatpush.bf16.msra.mxu2 %v961_v4  ;;  %1076 = vmatpush.bf16.msra.mxu3 %v961_v4 }
  0x45   : > { %418 = vmatpush.bf16.msra.mxu0 %v960_v5  ;;  %1077 = vmatpush.bf16.msra.mxu1 %v960_v5 }
  0x46   : > { %1078 = vmatpush.bf16.msra.mxu2 %v960_v5  ;;  %1079 = vmatpush.bf16.msra.mxu3 %v960_v5 }
  0x49   : > { %419 = vmatpush.bf16.msra.mxu0 %v959_v6  ;;  %1080 = vmatpush.bf16.msra.mxu1 %v959_v6 }
  0x4a   : > { %1081 = vmatpush.bf16.msra.mxu2 %v959_v6  ;;  %1082 = vmatpush.bf16.msra.mxu3 %v959_v6 }
  0x4d   : > { %420 = vmatpush.bf16.msra.mxu0 %v958_v7  ;;  %1083 = vmatpush.bf16.msra.mxu1 %v958_v7 }
  0x4e   : > { %1084 = vmatpush.bf16.msra.mxu2 %v958_v7  ;;  %1085 = vmatpush.bf16.msra.mxu3 %v958_v7 }
  0x50   : > { %421 = vmatmul.bf16.vlgmr.msra.gmra.mxu0 %v942_v8  ;;  %441 = vmatmul.bf16.vlgmr.msra.gmra.mxu1 %v946_v9 }
  0x51   : > { %461 = vmatmul.bf16.vlgmr.msra.gmra.mxu2 %v950_v10  ;;  %481 = vmatmul.bf16.vlgmr.msra.gmra.mxu3 %v954_v11 }
  0x60   : > { %426 = vmatmul.bf16.gmra.mxu0 %v943_v12  ;;  %446 = vmatmul.bf16.gmra.mxu1 %v947_v13 }
  0x61   : > { %466 = vmatmul.bf16.gmra.mxu2 %v951_v14  ;;  %486 = vmatmul.bf16.gmra.mxu3 %v955_v15 }
  0x70   : > { %431 = vmatmul.bf16.gmra.mxu0 %v944_v16  ;;  %451 = vmatmul.bf16.gmra.mxu1 %v948_v17 }
  0x71   : > { %471 = vmatmul.bf16.gmra.mxu2 %v952_v18  ;;  %491 = vmatmul.bf16.gmra.mxu3 %v956_v19 }
  0x80   : > { %436 = vmatmul.bf16.gmra.mxu0 %v945_v20  ;;  %456 = vmatmul.bf16.gmra.mxu1 %v949_v21 }
  0x81   : > { %476 = vmatmul.bf16.gmra.mxu2 %v953_v22  ;;  %496 = vmatmul.bf16.gmra.mxu3 %v957_v23 }
  0xcd   : > { %v422_v24 = vpop.f32.mrf.mxu0  ;;  %v1472_v25 = vpop.f32.mrf.mxu1 }
  0xce   : > { %v603_v57 = vmul.f32 %v422_v24, %v422_v24 }
  0xd4   : > { %v1474_v26 = vpop.f32.mrf.mxu2  ;;  %v1480_v31 = vpop.f32.mrf.mxu3 }
  0xd5   : > { %v424_v27 = vpop.f32.mrf.mxu0  ;;  %v1476_v28 = vpop.f32.mrf.mxu1 }
  0xd6   : > { %v970_v29 = vpack.c.bf16 %v424_v27, %v422_v24  ;;  %v990_v30 = vpack.c.bf16 %v1476_v28, %v1472_v25  ;;  %v604_v56 = vmul.f32 %v424_v27, %v424_v27  ;;  %v566_v59 = vadd.f32 %v424_v27, %v422_v24 }
  0xd7   : > { %v611_v27 = vmul.f32 %v1472_v25, %v1472_v25 }
  0xd8   : > { %971 = vst [vmem:[%s1484_s18] sm:$0xff] %v970_v29   ;;  %v635_v60 = vadd.f32 %v604_v56, %v603_v57 }
  0xd9   : > { %1050 = vst [vmem:[%s1484_s18 + $0x20] sm:$0xff] %v990_v30  }
  0xdc   : > { %v1488_v32 = vpop.f32.mrf.mxu2  ;;  %v1494_v36 = vpop.f32.mrf.mxu3 }
  0xdd   : > { %v427_v33 = vpop.f32.mrf.mxu0  ;;  %v1490_v34 = vpop.f32.mrf.mxu1  ;;  %v1010_v35 = vpack.c.bf16 %v1488_v32, %v1474_v26  ;;  %v1030_v37 = vpack.c.bf16 %v1494_v36, %v1480_v31 }
  0xde   : > { %v605_v58 = vmul.f32 %v427_v33, %v427_v33  ;;  %v567_v62 = vadd.f32 %v566_v59, %v427_v33 }
  0xdf   : > { %1054 = vst [vmem:[%s1484_s18 + $0x40] sm:$0xff] %v1010_v35  }
  0xe0   : > { %1058 = vst [vmem:[%s1484_s18 + $0x60] sm:$0xff] %v1030_v37   ;;  %v636_v0 = vadd.f32 %v635_v60, %v605_v58 }
  0xe4   : > { %v1500_v38 = vpop.f32.mrf.mxu2  ;;  %v1506_v43 = vpop.f32.mrf.mxu3 }
  0xe5   : > { %v429_v39 = vpop.f32.mrf.mxu0  ;;  %v1502_v40 = vpop.f32.mrf.mxu1 }
  0xe6   : > { %v975_v41 = vpack.c.bf16 %v429_v39, %v427_v33  ;;  %v995_v42 = vpack.c.bf16 %v1502_v40, %v1490_v34  ;;  %v606_v61 = vmul.f32 %v429_v39, %v429_v39  ;;  %v568_v5 = vadd.f32 %v567_v62, %v429_v39 }
  0xe7   : > { %v612_v33 = vmul.f32 %v1476_v28, %v1476_v28  ;;  %v613_v39 = vmul.f32 %v1490_v34, %v1490_v34 }
  0xe8   : > { %1047 = vst [vmem:[%s1484_s18 + $0x8] sm:$0xff] %v975_v41   ;;  %v637_v7 = vadd.f32 %v636_v0, %v606_v61 }
  0xe9   : > { %1051 = vst [vmem:[%s1484_s18 + $0x28] sm:$0xff] %v995_v42  }
  0xec   : > { %v1510_v44 = vpop.f32.mrf.mxu2  ;;  %v1516_v48 = vpop.f32.mrf.mxu3 }
  0xed   : > { %v432_v45 = vpop.f32.mrf.mxu0  ;;  %v1512_v46 = vpop.f32.mrf.mxu1  ;;  %v1015_v47 = vpack.c.bf16 %v1510_v44, %v1500_v38  ;;  %v1035_v49 = vpack.c.bf16 %v1516_v48, %v1506_v43 }
  0xee   : > { %v607_v1 = vmul.f32 %v432_v45, %v432_v45  ;;  %v569_v10 = vadd.f32 %v568_v5, %v432_v45 }
  0xef   : > { %1055 = vst [vmem:[%s1484_s18 + $0x48] sm:$0xff] %v1015_v47   ;;  %v614_v47 = vmul.f32 %v1502_v40, %v1502_v40 }
  0xf0   : > { %1059 = vst [vmem:[%s1484_s18 + $0x68] sm:$0xff] %v1035_v49   ;;  %v638_v11 = vadd.f32 %v637_v7, %v607_v1 }
  0xf4   : > { %v1522_v50 = vpop.f32.mrf.mxu2  ;;  %v1528_v55 = vpop.f32.mrf.mxu3 }
  0xf5   : > { %v434_v51 = vpop.f32.mrf.mxu0  ;;  %v1524_v52 = vpop.f32.mrf.mxu1 }
  0xf6   : > { %v980_v53 = vpack.c.bf16 %v434_v51, %v432_v45  ;;  %v1000_v54 = vpack.c.bf16 %v1524_v52, %v1512_v46  ;;  %v608_v8 = vmul.f32 %v434_v51, %v434_v51  ;;  %v570_v13 = vadd.f32 %v569_v10, %v434_v51 }
  0xf8   : > { %1048 = vst [vmem:[%s1484_s18 + $0x10] sm:$0xff] %v980_v53   ;;  %v639_v14 = vadd.f32 %v638_v11, %v608_v8  ;;  %v615_v53 = vmul.f32 %v1512_v46, %v1512_v46 }
  0xf9   : > { %1052 = vst [vmem:[%s1484_s18 + $0x30] sm:$0xff] %v1000_v54  }
  0xfc   : > { %v1532_v63 = vpop.f32.mrf.mxu2  ;;  %v1538_v6 = vpop.f32.mrf.mxu3 }
  0xfd   : > { %v437_v2 = vpop.f32.mrf.mxu0  ;;  %v1534_v3 = vpop.f32.mrf.mxu1  ;;  %v1020_v4 = vpack.c.bf16 %v1532_v63, %v1522_v50  ;;  %v1040_v9 = vpack.c.bf16 %v1538_v6, %v1528_v55 }
  0xfe   : > { %v609_v12 = vmul.f32 %v437_v2, %v437_v2  ;;  %v571_v15 = vadd.f32 %v570_v13, %v437_v2 }
  0xff   : > { %1056 = vst [vmem:[%s1484_s18 + $0x50] sm:$0xff] %v1020_v4  }
 0x100   : > { %1060 = vst [vmem:[%s1484_s18 + $0x70] sm:$0xff] %v1040_v9   ;;  %v640_v17 = vadd.f32 %v639_v14, %v609_v12 }
 0x104   : > { %v1544_v16 = vpop.f32.mrf.mxu2  ;;  %v1548_v24 = vpop.f32.mrf.mxu3 }
 0x105   : > { %v439_v18 = vpop.f32.mrf.mxu0  ;;  %v459_v19 = vpop.f32.mrf.mxu1 }
 0x106   : > { %v985_v20 = vpack.c.bf16 %v439_v18, %v437_v2  ;;  %v572_v21 = vadd.f32 %v571_v15, %v439_v18  ;;  %v610_v22 = vmul.f32 %v439_v18, %v439_v18  ;;  %v1005_v23 = vpack.c.bf16 %v459_v19, %v1534_v3 }
 0x108   : > { %1049 = vst [vmem:[%s1484_s18 + $0x18] sm:$0xff] %v985_v20   ;;  %v573_v29 = vadd.f32 %v572_v21, %v1472_v25  ;;  %v641_v30 = vadd.f32 %v640_v17, %v610_v22 }
 0x109   : > { %1053 = vst [vmem:[%s1484_s18 + $0x38] sm:$0xff] %v1005_v23  }
 0x10a   : > { %v574_v35 = vadd.f32 %v573_v29, %v1476_v28  ;;  %v642_v37 = vadd.f32 %v641_v30, %v611_v27 }
 0x10c   : > { %v575_v25 = vadd.f32 %v574_v35, %v1490_v34  ;;  %v643_v41 = vadd.f32 %v642_v37, %v612_v33  ;;  %v479_v42 = vpop.f32.mrf.mxu2  ;;  %v1569_v51 = vpop.f32.mrf.mxu3 }
 0x10d   : > { %v1025_v45 = vpack.c.bf16 %v479_v42, %v1544_v16  ;;  %v1045_v34 = vpack.c.bf16 %v1569_v51, %v1548_v24 }
 0x10e   : > { %v644_v49 = vadd.f32 %v643_v41, %v613_v39  ;;  %v576_v28 = vadd.f32 %v575_v25, %v1502_v40  ;;  %v616_v40 = vmul.f32 %v1524_v52, %v1524_v52 }
 0x10f   : > { %1057 = vst [vmem:[%s1484_s18 + $0x58] sm:$0xff] %v1025_v45  }
 0x110   : > { %v577_v54 = vadd.f32 %v576_v28, %v1512_v46  ;;  %v645_v56 = vadd.f32 %v644_v49, %v614_v47  ;;  %1061 = vst [vmem:[%s1484_s18 + $0x78] sm:$0xff] %v1045_v34  }
 0x112   : > { %v578_v57 = vadd.f32 %v577_v54, %v1524_v52  ;;  %v646_v58 = vadd.f32 %v645_v56, %v615_v53 }
 0x113   : > { %1239 = shalt.err (!%p1236_p10)
}
 0x114   : > { %s1319_s20 = smov 64   ;;  %s1320_s25 = smov 4   ;;  %v579_v46 = vadd.f32 %v578_v57, %v1534_v3  ;;  %v617_v52 = vmul.f32 %v1534_v3, %v1534_v3  ;;  %v647_v59 = vadd.f32 %v646_v58, %v616_v40  ;;  %v618_v62 = vmul.f32 %v459_v19, %v459_v19 }
 0x115   : > { %1092 = dma.vmem_to_hbm [thread:$0]  (%p1410_p3), %s1571_s21, 2048, %s1573_s22, %s676_s24, %s1319_s20, %s1319_s20, %s1320_s25   ;;  %v619_v0 = vmul.f32 %v1474_v26, %v1474_v26  ;;  %v620_v4 = vmul.f32 %v1488_v32, %v1488_v32  ;;  %v621_v8 = vmul.f32 %v1500_v38, %v1500_v38  ;;  %v622_v10 = vmul.f32 %v1510_v44, %v1510_v44 }
 0x116   : > { %v648_v60 = vadd.f32 %v647_v59, %v617_v52  ;;  %v580_v61 = vadd.f32 %v579_v46, %v459_v19  ;;  %v624_v15 = vmul.f32 %v1532_v63, %v1532_v63  ;;  %v625_v19 = vmul.f32 %v1544_v16, %v1544_v16  ;;  %s837_s18 = sshll.u32 %s1440_s6, 1  ;;  %s938_s23 = sshll.u32 %s1362_s16, 1 }
 0x117   : > { %v626_v21 = vmul.f32 %v479_v42, %v479_v42  ;;  %v627_v22 = vmul.f32 %v1480_v31, %v1480_v31  ;;  %v628_v27 = vmul.f32 %v1494_v36, %v1494_v36  ;;  %v629_v30 = vmul.f32 %v1506_v43, %v1506_v43  ;;  %s708_s17 = scalar_lea.hbm %s1684_s3, %s938_s23  ;;  %s218_s21 = scalar_lea.vmem [#allocation8], %s837_s18 }
 0x118   : > { %v581_v1 = vadd.f32 %v580_v61, %v1474_v26  ;;  %v649_v2 = vadd.f32 %v648_v60, %v618_v62  ;;  %v623_v26 = vmul.f32 %v1522_v50, %v1522_v50  ;;  %v630_v35 = vmul.f32 %v1516_v48, %v1516_v48  ;;  %s710_s22 = sshll.u32 %s218_s21, 4  ;;  %s712_s24 = sshll.u32 %s708_s17, 4  ;;  %s711_s22 = int_to_ptr.vmem [resolvable:$true] %s710_s22  ;;  %s713_s24 = int_to_ptr.hbm [resolvable:$true] %s712_s24 }
 0x119   : > { %vm672_vm0 = vcmask 1040384   ;;  %s681_s16 = scalar_lea.sflag [#allocation9], %s1440_s6  ;;  %s1254_s29 = sshra.s32 %s713_s24, 4  ;;  %s1255_s29 = int_to_ptr.hbm [resolvable:$true] %s1254_s29 }
 0x11a   : > { %v582_v5 = vadd.f32 %v581_v1, %v1488_v32  ;;  %v650_v7 = vadd.f32 %v649_v2, %v619_v0  ;;  %s1256_s30 = scalar_lea.hbm %s1255_s29, 2  ;;  %s1260_s9 = scalar_lea.hbm %s1684_s3, 4 }
 0x11b   : > { %p1257_p12 = scmp.ne.s32.totalorder %s1255_s29, %s1256_s30  ;;  %p1261_p5 = scmp.lt.s32.totalorder %s1255_s29, %s1684_s3 }
 0x11c   : > { %v583_v3 = vadd.f32 %v582_v5, %v1500_v38  ;;  %v651_v9 = vadd.f32 %v650_v7, %v620_v4  ;;  %p1262_p7 = scmp.lt.s32.totalorder %s1260_s9, %s1256_s30 }
 0x11d   : > { %p1258_p13 = pnand %p1257_p12, %p1410_p3 }
 0x11e   : > { %v652_v11 = vadd.f32 %v651_v9, %v621_v8  ;;  %v584_v12 = vadd.f32 %v583_v3, %v1510_v44  ;;  %p1263_p1 = por %p1262_p7, %p1261_p5 }
 0x11f   : > { %p1259_p0 = pneg %p1258_p13 }
 0x120   : > { %v585_v13 = vadd.f32 %v584_v12, %v1522_v50  ;;  %v653_v14 = vadd.f32 %v652_v11, %v622_v10 }
 0x121   : > { %p1264_p4 = pnand %p1263_p1, %p1259_p0 }
 0x122   : > { %v586_v32 = vadd.f32 %v585_v13, %v1532_v63  ;;  %v654_v17 = vadd.f32 %v653_v14, %v623_v26 }
 0x124   : > { %v655_v38 = vadd.f32 %v654_v17, %v624_v15  ;;  %v587_v18 = vadd.f32 %v586_v32, %v1544_v16 }
 0x126   : > { %v656_v20 = vadd.f32 %v655_v38, %v625_v19  ;;  %v588_v44 = vadd.f32 %v587_v18, %v479_v42 }
 0x128   : > { %v589_v50 = vadd.f32 %v588_v44, %v1480_v31  ;;  %v657_v23 = vadd.f32 %v656_v20, %v626_v21  ;;  %v631_v31 = vmul.f32 %v1528_v55, %v1528_v55 }
 0x12a   : > { %v590_v63 = vadd.f32 %v589_v50, %v1494_v36  ;;  %v658_v29 = vadd.f32 %v657_v23, %v627_v22 }
 0x12c   : > { %v591_v16 = vadd.f32 %v590_v63, %v1506_v43  ;;  %v659_v33 = vadd.f32 %v658_v29, %v628_v27  ;;  %v632_v43 = vmul.f32 %v1538_v6, %v1538_v6 }
 0x12e   : > { %v660_v37 = vadd.f32 %v659_v33, %v629_v30  ;;  %v592_v39 = vadd.f32 %v591_v16, %v1516_v48  ;;  %v633_v48 = vmul.f32 %v1548_v24, %v1548_v24 }
 0x130   : > { %v593_v25 = vadd.f32 %v592_v39, %v1528_v55  ;;  %v661_v41 = vadd.f32 %v660_v37, %v630_v35  ;;  %v634_v55 = vmul.f32 %v1569_v51, %v1569_v51 }
 0x132   : > { %v594_v36 = vadd.f32 %v593_v25, %v1538_v6  ;;  %v662_v42 = vadd.f32 %v661_v41, %v631_v31 }
 0x134   : > { %v663_v45 = vadd.f32 %v662_v42, %v632_v43  ;;  %v595_v47 = vadd.f32 %v594_v36, %v1548_v24 }
 0x136   : > { %v664_v49 = vadd.f32 %v663_v45, %v633_v48  ;;  %v596_v28 = vadd.f32 %v595_v47, %v1569_v51 }
 0x138   : > { %v597_v34 = vrot.slane %v596_v28, 4  ;;  %v665_v53 = vadd.f32 %v664_v49, %v634_v55 }
 0x13a   : > { %v598_v54 = vadd.f32 %v597_v34, %v596_v28  ;;  %v666_v56 = vrot.slane %v665_v53, 4 }
 0x13c   : > { %v599_v40 = vrot.slane %v598_v54, 2  ;;  %v667_v57 = vadd.f32 %v666_v56, %v665_v53 }
 0x13e   : > { %v600_v6 = vadd.f32 %v599_v40, %v598_v54  ;;  %v668_v58 = vrot.slane %v667_v57, 2 }
 0x140   : > { %v601_v24 = vrot.slane %v600_v6, 1  ;;  %v669_v46 = vadd.f32 %v668_v58, %v667_v57 }
 0x142   : > { %v670_v52 = vrot.slane %v669_v46, 1  ;;  %v602_v51 = vadd.f32 %v601_v24, %v600_v6 }
 0x144   : > { %v671_v59 = vadd.f32 %v670_v52, %v669_v46 }
 0x146   : > { %v673_v60 = vsel %vm672_vm0, %v602_v51, %v671_v59 }
 0x147   : > { %674 = vst [vmem:[%s218_s21] sm:$0x3] %v673_v60 }
 0x148   : > { %1267 = shalt.err (!%p1264_p4)
}
 0x149   : > { %1093 = dma.vmem_to_hbm [thread:$0]  (%p1410_p3), %s711_s22, 32, %s713_s24, %s681_s16  }
 0x14a PF: > { %s724_s6 = sand.u32 1, %s1302_s12   ;;  %p1690_p8 = scmp.ge.s32.totalorder %s1314_s15, 2 }
 0x14b   : > { %s725_s20 = scalar_lea.sflag [#allocation4], %s724_s6 }
 0x14c   : > { %p1105_p11 = pnand %p1690_p8, %p1376_p6 }
 0x14e   : > { %p1106_p9 = pneg %p1105_p11 }
 0x150   : > { %1293 = dma.done.wait (%p1106_p9), %s725_s20, 2048  }
 0x151   : > { %1295 = vsyncadd (%p1106_p9), %s725_s20, 4294965248  ;;  %s735_s25 = scalar_lea.sflag [#allocation9], %s724_s6 }
 0x152   : > { %1297 = dma.done.wait (%p1106_p9), %s735_s25, 32  }
 0x153   : > { %1299 = vsyncadd (%p1106_p9), %s735_s25, 4294967264  ;;  %p21_p3 = scmp.ge.s32.totalorder %s1394_s26, 4   ;;  %s1691_s12 = smov %s1306_s13 }
 0x154   : > { %s1692_s13 = smov %s1310_s14  ;;  %s1693_s14 = smov %s1406_s4 }
 0x155   : > { %s1694_s15 = smov %s1394_s26  ;;  %23 = sbr.rel (!%p21_p3) target bundleno = 8 (0x8), region = 94 }
 0x15a   :  { %741 = vsyncpa [#allocation3], 1 }
 0x15b   :  { %743 = vsyncpa [#allocation3 + $0x1], 1 }
 0x15c   :  { %744 = vsyncpa [#allocation6], 1 }
 0x15d   :  { %745 = vsyncpa [#allocation4], 1 }
 0x15e   :  { %747 = vsyncpa [#allocation4 + $0x1], 1 }
 0x15f   :  { %748 = vsyncpa [#allocation9], 1 }
 0x160   :  { %750 = vsyncpa [#allocation9 + $0x1], 1 }

</bundles_post_ra>
